<compile_context>
chip_gen: v6e
topology: v6e:2x2x1
jax: 0.10.0
libtpu: 0.0.40
codegen_flags: <defaults>
</compile_context>

<pallas_src>
import functools

import jax
import jax.numpy as jnp
from jax import lax
from jax.experimental import pallas as pl
from jax.experimental.pallas import tpu as pltpu


def _round_up(x, m):
    return ((x + m - 1) // m) * m


# --------------------------------------------------------------------------- #
# Kernel
# --------------------------------------------------------------------------- #
def _ce_body(feat_ref, w_ref, b_ref, t_ref, loss_ref, m_scr, l_scr, acc_scr,
             *, smoothing, num_classes, logits_ref):
    ci = pl.program_id(1)
    nc = pl.num_programs(1)

    @pl.when(ci == 0)
    def _():
        m_scr[...] = jnp.full_like(m_scr, -jnp.inf)
        l_scr[...] = jnp.zeros_like(l_scr)
        acc_scr[...] = jnp.zeros_like(acc_scr)

    feats = feat_ref[...]            # [Bt, E]  (MXU dtype, e.g. bf16)
    w = w_ref[...]                   # [Ct, E]  torch layout; transpose folded into dot
    logits = lax.dot_general(
        feats, w, (((1,), (1,)), ((), ())),
        preferred_element_type=jnp.float32)          # [Bt, Ct] f32 accumulator
    logits = logits + b_ref[...]                     # bias [1, Ct] f32

    if logits_ref is not None:
        logits_ref[...] = logits.astype(logits_ref.dtype)

    bt, ct = logits.shape
    col = lax.broadcasted_iota(jnp.int32, (bt, ct), 1) + ci * ct   # global class ids
    # NOTE: Cp = round_up(C, c_tile) guarantees every class tile holds >= 1 valid
    # class, so the -inf masking below can never produce exp(-inf - (-inf)) = NaN.
    valid = col < num_classes

    # --- online log-sum-exp across class tiles ---
    masked = jnp.where(valid, logits, -jnp.inf)
    m_prev = m_scr[...]
    m_new = jnp.maximum(m_prev, jnp.max(masked, axis=-1, keepdims=True))
    alpha = jnp.exp(m_prev - m_new)
    l_scr[...] = alpha * l_scr[...] + jnp.sum(jnp.exp(masked - m_new),
                                              axis=-1, keepdims=True)
    m_scr[...] = m_new

    # --- fused label-smoothing accumulator via two masked reductions ---
    #   sum_c q_c * logit_c  with  q_c = (1-s)*onehot_c + s/C   (valid classes only)
    tgt_sum = jnp.sum(jnp.where(col == t_ref[...], logits, 0.0),
                      axis=-1, keepdims=True)
    acc = (1.0 - smoothing) * tgt_sum
    if smoothing != 0.0:
        all_sum = jnp.sum(jnp.where(valid, logits, 0.0), axis=-1, keepdims=True)
        acc = acc + (smoothing / num_classes) * all_sum
    acc_scr[...] += acc

    @pl.when(ci == nc - 1)
    def _():
        loss_ref[...] = m_scr[...] + jnp.log(l_scr[...]) - acc_scr[...]


def _ce_kernel_with_logits(feat_ref, w_ref, b_ref, t_ref, logits_ref, loss_ref,
                           m_scr, l_scr, acc_scr, *, smoothing, num_classes):
    _ce_body(feat_ref, w_ref, b_ref, t_ref, loss_ref, m_scr, l_scr, acc_scr,
             smoothing=smoothing, num_classes=num_classes, logits_ref=logits_ref)


def _ce_kernel_loss_only(feat_ref, w_ref, b_ref, t_ref, loss_ref,
                         m_scr, l_scr, acc_scr, *, smoothing, num_classes):
    _ce_body(feat_ref, w_ref, b_ref, t_ref, loss_ref, m_scr, l_scr, acc_scr,
             smoothing=smoothing, num_classes=num_classes, logits_ref=None)


# --------------------------------------------------------------------------- #
# Tile sizing
# --------------------------------------------------------------------------- #
def _vmem_capacity_bytes():
    try:
        info = pltpu.get_tpu_info()
        for name in ("vmem_capacity_bytes", "vmem_bytes", "vmem_size_bytes"):
            cap = getattr(info, name, None)
            if cap:
                return int(cap)
    except Exception:
        pass
    return 64 * 1024 * 1024   # conservative default (v7x per-TC)


def _derive_tiles(B, C, Ep, f_bytes, w_bytes, out_bytes, budget, pack):
    """Pick (b_tile, c_tile) under a VMEM budget.

    Priorities: (1) b_tile large (it's the only knob that raises flops/byte of
    the weight stream), 256-aligned for the 256x256 MXU; (2) c_tile as large as
    fits — ideally nc == 1 so the weight is DMA'd once and stays VMEM-resident.
    """
    def need(bt, ct):
        return (2 * ct * Ep * w_bytes           # weight tile, double buffered
                + 2 * bt * Ep * f_bytes         # feature tile, double buffered
                + 2 * 8 * ct * 4                # bias tile (sublane-padded)
                + 2 * bt * ct * out_bytes       # logits output tile (0 if dropped)
                + 6 * bt * ct * 4               # in-kernel f32 temporaries
                + 16 * bt * 128 * 4)            # loss / targets / scratch

    if B > 256:
        b_tile = min(512, _round_up(B, 256))
    else:
        b_tile = _round_up(B, pack)             # single batch tile for small B

    if C <= 128:
        c_min = c_tile = 128
    else:
        c_min = 256
        c_tile = _round_up(C, 256)              # try whole (padded) head first

    while c_tile > c_min and need(b_tile, c_tile) > budget:
        c_tile = max(c_min, _round_up(c_tile // 2, 256))
    while need(b_tile, c_tile) > budget and b_tile > pack:
        b_tile = max(pack, _round_up(b_tile // 2, pack))
    return b_tile, c_tile


# --------------------------------------------------------------------------- #
# Wrapper
# --------------------------------------------------------------------------- #
def ce_forward(features, weight, bias, targets, smoothing=0.0, *,
               return_logits=True, logits_dtype=None, allow_bf16_mxu=True,
               b_tile=None, c_tile=None):
    """features: [B, E]; weight: [C, E] (torch Linear layout); bias: [C];
    targets: [B] int.  Returns (scalar loss, logits [B, C] or None)."""
    B, E = features.shape
    C, E_w = weight.shape
    assert E == E_w, "weight must be [nb_classes, sz_embedding]"

    orig_dtype = jnp.promote_types(features.dtype, weight.dtype)
    out_dtype = jnp.dtype(logits_dtype) if logits_dtype is not None else orig_dtype

    # MXU operand dtypes: cast f32 operands to bf16 (f32 accumulation kept).
    mxu_f_dtype = (jnp.bfloat16 if (allow_bf16_mxu and
                                    jnp.dtype(features.dtype) == jnp.float32)
                   else features.dtype)
    mxu_w_dtype = (jnp.bfloat16 if (allow_bf16_mxu and
                                    jnp.dtype(weight.dtype) == jnp.float32)
                   else weight.dtype)

    f_bytes = jnp.dtype(mxu_f_dtype).itemsize
    w_bytes = jnp.dtype(mxu_w_dtype).itemsize
    out_bytes = jnp.dtype(out_dtype).itemsize if return_logits else 0

    Ep = _round_up(E, 128)
    pack = max(8, 32 // max(f_bytes, 1))        # 8 for f32, 16 for bf16, 32 for int8

    vmem_cap = _vmem_capacity_bytes()
    budget = (vmem_cap * 3) // 5                # headroom for compiler scratch
    vmem_limit = int(min(vmem_cap - (4 << 20), int(vmem_cap * 0.94)))

    auto_b, auto_c = _derive_tiles(B, C, Ep, f_bytes, w_bytes, out_bytes,
                                   budget, pack)
    if b_tile is None:
        b_tile = auto_b
    if c_tile is None:
        c_tile = auto_c

    Bp = _round_up(B, b_tile)
    Cp = _round_up(C, c_tile)
    nb, nc = Bp // b_tile, Cp // c_tile

    feats_p = jnp.zeros((Bp, Ep), mxu_f_dtype).at[:B, :E].set(
        features.astype(mxu_f_dtype))
    w_p = jnp.zeros((Cp, Ep), mxu_w_dtype).at[:C, :E].set(
        weight.astype(mxu_w_dtype))
    b_p = jnp.zeros((1, Cp), jnp.float32).at[0, :C].set(bias.astype(jnp.float32))
    t_p = jnp.zeros((Bp, 1), jnp.int32).at[:B, 0].set(targets.astype(jnp.int32))

    in_specs = [
        pl.BlockSpec((b_tile, Ep), lambda bi, ci: (bi, 0)),     # features
        pl.BlockSpec((c_tile, Ep), lambda bi, ci: (ci, 0)),     # weight [C, E]
        pl.BlockSpec((1, c_tile), lambda bi, ci: (0, ci)),      # bias
        pl.BlockSpec((b_tile, 1), lambda bi, ci: (bi, 0)),      # targets
    ]
    loss_spec = pl.BlockSpec((b_tile, 1), lambda bi, ci: (bi, 0))
    loss_shape = jax.ShapeDtypeStruct((Bp, 1), jnp.float32)
    scratch = [pltpu.VMEM((b_tile, 1), jnp.float32)] * 3
    compiler_params = pltpu.CompilerParams(
        dimension_semantics=("parallel", "arbitrary"),
        vmem_limit_bytes=vmem_limit,
    )

    if return_logits:
        kernel = functools.partial(_ce_kernel_with_logits,
                                   smoothing=float(smoothing), num_classes=C)
        logits_p, row_loss = pl.pallas_call(
            kernel,
            out_shape=(jax.ShapeDtypeStruct((Bp, Cp), out_dtype), loss_shape),
            grid_spec=pltpu.PrefetchScalarGridSpec(
                num_scalar_prefetch=0,
                grid=(nb, nc),                      # class/reduction axis last
                in_specs=in_specs,
                out_specs=[pl.BlockSpec((b_tile, c_tile), lambda bi, ci: (bi, ci)),
                           loss_spec],
                scratch_shapes=scratch),
            compiler_params=compiler_params,
        )(feats_p, w_p, b_p, t_p)
        logits = logits_p[:B, :C]
    else:
        kernel = functools.partial(_ce_kernel_loss_only,
                                   smoothing=float(smoothing), num_classes=C)
        row_loss = pl.pallas_call(
            kernel,
            out_shape=loss_shape,
            grid_spec=pltpu.PrefetchScalarGridSpec(
                num_scalar_prefetch=0,
                grid=(nb, nc),
                in_specs=in_specs,
                out_specs=loss_spec,
                scratch_shapes=scratch),
            compiler_params=compiler_params,
        )(feats_p, w_p, b_p, t_p)
        logits = None

    loss = jnp.mean(row_loss[:B, 0])
    return loss, logits


# --------------------------------------------------------------------------- #
# Self-test
# --------------------------------------------------------------------------- #
if __name__ == "__main__":
    # Small shapes consistent with the module's forward:
    # batch B=8, sz_embedding E=32, nb_classes C=16.
    B, E, C = 8, 32, 16
    smoothing = 0.1

    key = jax.random.PRNGKey(0)
    k_feat, k_w, k_b, k_t = jax.random.split(key, 4)

    # Deterministic init mimicking torch.nn.Linear (uniform +/- 1/sqrt(E)).
    bound = 1.0 / (E ** 0.5)
    weight = jax.random.uniform(k_w, (C, E), jnp.float32, -bound, bound)
    bias = jax.random.uniform(k_b, (C,), jnp.float32, -bound, bound)

    features = jax.random.normal(k_feat, (B, E), jnp.float32)
    targets = jax.random.randint(k_t, (B,), 0, C, jnp.int32)

    # Pure-JAX reference (same math as F.cross_entropy with label_smoothing).
    logits_ref = features @ weight.T + bias
    logp_ref = jax.nn.log_softmax(logits_ref, axis=-1)
    onehot = jax.nn.one_hot(targets, C, dtype=jnp.float32)
    q = (1.0 - smoothing) * onehot + smoothing / C
    loss_ref = jnp.mean(-jnp.sum(q * logp_ref, axis=-1))

    # 1) Bit-accurate f32 path (module semantics, returns logits).
    loss_f32, logits_f32 = ce_forward(features, weight, bias, targets,
                                      smoothing=smoothing,
                                      allow_bf16_mxu=False, return_logits=True)
    jax.block_until_ready((loss_f32, logits_f32))
    assert jnp.allclose(logits_f32, logits_ref, atol=1e-5, rtol=1e-5)
    assert jnp.allclose(loss_f32, loss_ref, atol=1e-5, rtol=1e-5)

    # 2) Default fast path (bf16 MXU operands, fused loss-only mode).
    loss_bf16, _ = ce_forward(features, weight, bias, targets,
                              smoothing=smoothing,
                              allow_bf16_mxu=True, return_logits=False)
    jax.block_until_ready(loss_bf16)
    assert jnp.allclose(loss_bf16, loss_ref, atol=2e-2, rtol=2e-2)

    print("KERNEL_OK")
</pallas_src>

<mosaic_0001>
module attributes {stable_mosaic.version = 11 : i64} {
  func.func @_ce_kernel_with_logits(%arg0: i32, %arg1: i32, %arg2: memref<8x128xf32, #tpu.memory_space<vmem>>, %arg3: memref<128x128xf32, #tpu.memory_space<vmem>>, %arg4: memref<1x128xf32, #tpu.memory_space<vmem>>, %arg5: memref<8x1xi32, #tpu.memory_space<vmem>>, %arg6: memref<8x128xf32, #tpu.memory_space<vmem>>, %arg7: memref<8x1xf32, #tpu.memory_space<vmem>>, %arg8: memref<8x1xf32, #tpu.memory_space<vmem>>, %arg9: memref<8x1xf32, #tpu.memory_space<vmem>>, %arg10: memref<8x1xf32, #tpu.memory_space<vmem>>) attributes {dimension_semantics = [#tpu.dimension_semantics<parallel>, #tpu.dimension_semantics<arbitrary>], iteration_bounds = array<i64: 1, 1>, scalar_prefetch = 0 : i64, scratch_operands = 3 : i64, tpu.core_type = #tpu.core_type<tc>, window_params = [{transform_indices = @transform_0, window_bounds = array<i64: 8, 128>}, {transform_indices = @transform_1, window_bounds = array<i64: 128, 128>}, {transform_indices = @transform_2, window_bounds = array<i64: 1, 128>}, {transform_indices = @transform_3, window_bounds = array<i64: 8, 1>}, {transform_indices = @transform_4, window_bounds = array<i64: 8, 128>}, {transform_indices = @transform_5, window_bounds = array<i64: 8, 1>}]} {
    %c0_i32 = arith.constant 0 : i32
    %0 = arith.cmpi eq, %arg1, %c0_i32 : i32
    %1 = arith.extui %0 : i1 to i32
    %c0_i32_0 = arith.constant 0 : i32
    %2 = arith.cmpi ne, %1, %c0_i32_0 : i32
    scf.if %2 {
      %cst_33 = arith.constant 0xFF800000 : f32
      %56 = vector.broadcast %cst_33 : f32 to vector<8x1xf32>
      %c0_34 = arith.constant 0 : index
      %c0_35 = arith.constant 0 : index
      %57 = vector.load %arg8[%c0_34, %c0_35] : memref<8x1xf32, #tpu.memory_space<vmem>>, vector<8x1xf32>
      tpu.vector_store %arg8[%c0_34, %c0_35], %56 {strides = array<i32>} : memref<8x1xf32, #tpu.memory_space<vmem>>, vector<8x1xf32>,
      %cst_36 = arith.constant 0.000000e+00 : f32
      %58 = vector.broadcast %cst_36 : f32 to vector<8x1xf32>
      %c0_37 = arith.constant 0 : index
      %c0_38 = arith.constant 0 : index
      %59 = vector.load %arg9[%c0_37, %c0_38] : memref<8x1xf32, #tpu.memory_space<vmem>>, vector<8x1xf32>
      tpu.vector_store %arg9[%c0_37, %c0_38], %58 {strides = array<i32>} : memref<8x1xf32, #tpu.memory_space<vmem>>, vector<8x1xf32>,
      %cst_39 = arith.constant 0.000000e+00 : f32
      %60 = vector.broadcast %cst_39 : f32 to vector<8x1xf32>
      %c0_40 = arith.constant 0 : index
      %c0_41 = arith.constant 0 : index
      %61 = vector.load %arg10[%c0_40, %c0_41] : memref<8x1xf32, #tpu.memory_space<vmem>>, vector<8x1xf32>
      tpu.vector_store %arg10[%c0_40, %c0_41], %60 {strides = array<i32>} : memref<8x1xf32, #tpu.memory_space<vmem>>, vector<8x1xf32>,
    } else {
    }
    %c0 = arith.constant 0 : index
    %c0_1 = arith.constant 0 : index
    %3 = vector.load %arg2[%c0, %c0_1] : memref<8x128xf32, #tpu.memory_space<vmem>>, vector<8x128xf32>
    %c0_2 = arith.constant 0 : index
    %c0_3 = arith.constant 0 : index
    %4 = vector.load %arg3[%c0_2, %c0_3] : memref<128x128xf32, #tpu.memory_space<vmem>>, vector<128x128xf32>
    %cst = arith.constant dense<0.000000e+00> : vector<8x128xf32>
    %5 = tpu.matmul %3, %4, %cst {dimension_numbers = #tpu.dot_dimension_numbers<[1], [1], [0], [0], [0, 0, 1, 0], [], []>} : vector<8x128xf32>, vector<128x128xf32>, vector<8x128xf32> -> vector<8x128xf32>
    %c0_4 = arith.constant 0 : index
    %c0_5 = arith.constant 0 : index
    %6 = vector.load %arg4[%c0_4, %c0_5] : memref<1x128xf32, #tpu.memory_space<vmem>>, vector<1x128xf32>
    %7 = vector.broadcast %6 : vector<1x128xf32> to vector<8x128xf32>
    %8 = arith.addf %5, %7 : vector<8x128xf32>
    %c0_6 = arith.constant 0 : index
    %c0_7 = arith.constant 0 : index
    %9 = vector.load %arg6[%c0_6, %c0_7] : memref<8x128xf32, #tpu.memory_space<vmem>>, vector<8x128xf32>
    tpu.vector_store %arg6[%c0_6, %c0_7], %8 {strides = array<i32>} : memref<8x128xf32, #tpu.memory_space<vmem>>, vector<8x128xf32>,
    %10 = tpu.iota {dimensions = array<i32: 1>} : vector<8x128xi32>
    %c128_i32 = arith.constant 128 : i32
    %11 = arith.muli %arg1, %c128_i32 : i32
    %12 = vector.broadcast %11 : i32 to vector<8x128xi32>
    %13 = arith.addi %10, %12 : vector<8x128xi32>
    %c16_i32 = arith.constant 16 : i32
    %14 = vector.broadcast %c16_i32 : i32 to vector<8x128xi32>
    %15 = arith.cmpi slt, %13, %14 : vector<8x128xi32>
    %cst_8 = arith.constant 0xFF800000 : f32
    %16 = vector.broadcast %cst_8 : f32 to vector<8x128xf32>
    %17 = arith.select %15, %8, %16 : vector<8x128xi1>, vector<8x128xf32>
    %c0_9 = arith.constant 0 : index
    %c0_10 = arith.constant 0 : index
    %18 = vector.load %arg8[%c0_9, %c0_10] : memref<8x1xf32, #tpu.memory_space<vmem>>, vector<8x1xf32>
    %cst_11 = arith.constant dense<0xFF800000> : vector<8xf32>
    %19 = vector.multi_reduction <maximumf>, %17, %cst_11 [1] : vector<8x128xf32> to vector<8xf32>
    %20 = vector.shape_cast %19 : vector<8xf32> to vector<8x1xf32>
    %21 = arith.maximumf %18, %20 : vector<8x1xf32>
    %22 = arith.subf %18, %21 : vector<8x1xf32>
    %23 = math.exp %22 : vector<8x1xf32>
    %c0_12 = arith.constant 0 : index
    %c0_13 = arith.constant 0 : index
    %24 = vector.load %arg9[%c0_12, %c0_13] : memref<8x1xf32, #tpu.memory_space<vmem>>, vector<8x1xf32>
    %25 = arith.mulf %23, %24 : vector<8x1xf32>
    %26 = vector.broadcast %21 : vector<8x1xf32> to vector<8x128xf32>
    %27 = arith.subf %17, %26 : vector<8x128xf32>
    %28 = math.exp %27 : vector<8x128xf32>
    %cst_14 = arith.constant dense<0.000000e+00> : vector<8xf32>
    %29 = vector.multi_reduction <add>, %28, %cst_14 [1] : vector<8x128xf32> to vector<8xf32>
    %30 = vector.shape_cast %29 : vector<8xf32> to vector<8x1xf32>
    %31 = arith.addf %25, %30 : vector<8x1xf32>
    %c0_15 = arith.constant 0 : index
    %c0_16 = arith.constant 0 : index
    %32 = vector.load %arg9[%c0_15, %c0_16] : memref<8x1xf32, #tpu.memory_space<vmem>>, vector<8x1xf32>
    tpu.vector_store %arg9[%c0_15, %c0_16], %31 {strides = array<i32>} : memref<8x1xf32, #tpu.memory_space<vmem>>, vector<8x1xf32>,
    %c0_17 = arith.constant 0 : index
    %c0_18 = arith.constant 0 : index
    %33 = vector.load %arg8[%c0_17, %c0_18] : memref<8x1xf32, #tpu.memory_space<vmem>>, vector<8x1xf32>
    tpu.vector_store %arg8[%c0_17, %c0_18], %21 {strides = array<i32>} : memref<8x1xf32, #tpu.memory_space<vmem>>, vector<8x1xf32>,
    %c0_19 = arith.constant 0 : index
    %c0_20 = arith.constant 0 : index
    %34 = vector.load %arg5[%c0_19, %c0_20] : memref<8x1xi32, #tpu.memory_space<vmem>>, vector<8x1xi32>
    %35 = vector.broadcast %34 : vector<8x1xi32> to vector<8x128xi32>
    %36 = arith.cmpi eq, %13, %35 : vector<8x128xi32>
    %cst_21 = arith.constant 0.000000e+00 : f32
    %37 = vector.broadcast %cst_21 : f32 to vector<8x128xf32>
    %38 = arith.select %36, %8, %37 : vector<8x128xi1>, vector<8x128xf32>
    %cst_22 = arith.constant dense<0.000000e+00> : vector<8xf32>
    %39 = vector.multi_reduction <add>, %38, %cst_22 [1] : vector<8x128xf32> to vector<8xf32>
    %40 = vector.shape_cast %39 : vector<8xf32> to vector<8x1xf32>
    %cst_23 = arith.constant 0.899999976 : f32
    %41 = vector.broadcast %cst_23 : f32 to vector<8x1xf32>
    %42 = arith.mulf %41, %40 : vector<8x1xf32>
    %cst_24 = arith.constant 0.000000e+00 : f32
    %43 = vector.broadcast %cst_24 : f32 to vector<8x128xf32>
    %44 = arith.select %15, %8, %43 : vector<8x128xi1>, vector<8x128xf32>
    %cst_25 = arith.constant dense<0.000000e+00> : vector<8xf32>
    %45 = vector.multi_reduction <add>, %44, %cst_25 [1] : vector<8x128xf32> to vector<8xf32>
    %46 = vector.shape_cast %45 : vector<8xf32> to vector<8x1xf32>
    %cst_26 = arith.constant 6.250000e-03 : f32
    %47 = vector.broadcast %cst_26 : f32 to vector<8x1xf32>
    %48 = arith.mulf %47, %46 : vector<8x1xf32>
    %49 = arith.addf %42, %48 : vector<8x1xf32>
    %c0_27 = arith.constant 0 : index
    %c0_28 = arith.constant 0 : index
    %50 = vector.load %arg10[%c0_27, %c0_28] : memref<8x1xf32, #tpu.memory_space<vmem>>, vector<8x1xf32>
    %51 = arith.addf %50, %49 : vector<8x1xf32>
    %c0_29 = arith.constant 0 : index
    %c0_30 = arith.constant 0 : index
    %52 = vector.load %arg10[%c0_29, %c0_30] : memref<8x1xf32, #tpu.memory_space<vmem>>, vector<8x1xf32>
    tpu.vector_store %arg10[%c0_29, %c0_30], %51 {strides = array<i32>} : memref<8x1xf32, #tpu.memory_space<vmem>>, vector<8x1xf32>,
    %c0_i32_31 = arith.constant 0 : i32
    %53 = arith.cmpi eq, %arg1, %c0_i32_31 : i32
    %54 = arith.extui %53 : i1 to i32
    %c0_i32_32 = arith.constant 0 : i32
    %55 = arith.cmpi ne, %54, %c0_i32_32 : i32
    scf.if %55 {
      %c0_33 = arith.constant 0 : index
      %c0_34 = arith.constant 0 : index
      %56 = vector.load %arg8[%c0_33, %c0_34] : memref<8x1xf32, #tpu.memory_space<vmem>>, vector<8x1xf32>
      %c0_35 = arith.constant 0 : index
      %c0_36 = arith.constant 0 : index
      %57 = vector.load %arg9[%c0_35, %c0_36] : memref<8x1xf32, #tpu.memory_space<vmem>>, vector<8x1xf32>
      %58 = math.log %57 : vector<8x1xf32>
      %59 = arith.addf %56, %58 : vector<8x1xf32>
      %c0_37 = arith.constant 0 : index
      %c0_38 = arith.constant 0 : index
      %60 = vector.load %arg10[%c0_37, %c0_38] : memref<8x1xf32, #tpu.memory_space<vmem>>, vector<8x1xf32>
      %61 = arith.subf %59, %60 : vector<8x1xf32>
      %c0_39 = arith.constant 0 : index
      %c0_40 = arith.constant 0 : index
      %62 = vector.load %arg7[%c0_39, %c0_40] : memref<8x1xf32, #tpu.memory_space<vmem>>, vector<8x1xf32>
      tpu.vector_store %arg7[%c0_39, %c0_40], %61 {strides = array<i32>} : memref<8x1xf32, #tpu.memory_space<vmem>>, vector<8x1xf32>,
    } else {
    }
    return
  }
  func.func @transform_0(%arg0: i32, %arg1: i32) -> (i32, i32) {
    %c0_i32 = arith.constant 0 : i32
    %c0_i32_0 = arith.constant 0 : i32
    return %arg0, %c0_i32 : i32, i32
  }
  func.func @transform_1(%arg0: i32, %arg1: i32) -> (i32, i32) {
    %c0_i32 = arith.constant 0 : i32
    %c0_i32_0 = arith.constant 0 : i32
    return %arg1, %c0_i32 : i32, i32
  }
  func.func @transform_2(%arg0: i32, %arg1: i32) -> (i32, i32) {
    %c0_i32 = arith.constant 0 : i32
    %c0_i32_0 = arith.constant 0 : i32
    return %c0_i32, %arg1 : i32, i32
  }
  func.func @transform_3(%arg0: i32, %arg1: i32) -> (i32, i32) {
    %c0_i32 = arith.constant 0 : i32
    %c0_i32_0 = arith.constant 0 : i32
    return %arg0, %c0_i32 : i32, i32
  }
  func.func @transform_4(%arg0: i32, %arg1: i32) -> (i32, i32) {
    %c0_i32 = arith.constant 0 : i32
    return %arg0, %arg1 : i32, i32
  }
  func.func @transform_5(%arg0: i32, %arg1: i32) -> (i32, i32) {
    %c0_i32 = arith.constant 0 : i32
    %c0_i32_0 = arith.constant 0 : i32
    return %arg0, %c0_i32 : i32, i32
  }
}

</mosaic_0001>

<bundles_post_ra>
// kernel: tpu_custom_call.1
= control target key start
LH: loop header
LB: loop body
LE: loop exit
PB: predicated region body
PF: predicated region fallthrough
CT: control target
= control target key end

     0   :  { %11 = vsyncpa [#allocation6], 0  ;;  %s390_s0 = inlined_call_operand.vmem [shape: f32[8,128], index: 0, kind: input, shape index: {}]   ;;  %s391_s1 = inlined_call_operand.hbm [shape: f32[128,128], index: 1, kind: input, shape index: {}]   ;;  %s392_s2 = inlined_call_operand.vmem [shape: f32[1,128], index: 2, kind: input, shape index: {}]   ;;  %s393_s3 = inlined_call_operand.vmem [shape: s32[8,1], index: 3, kind: input, shape index: {}]   ;;  %s394_s4 = inlined_call_operand.hbm [shape: f32[8,128], index: 4, kind: output, shape index: {0}]   ;;  %s395_s5 = inlined_call_operand.vmem [shape: f32[8,1], index: 5, kind: output, shape index: {1}]  }
   0x1   :  { %12 = vsyncpa [#allocation7], 0  ;;  %s327_s18 = smov [#allocation5]  }
   0x2   :  { %s20_s19 = sshll.u32 %s327_s18, 4  ;;  %s21_s19 = int_to_ptr.vmem [resolvable:$true] %s20_s19 }
   0x3   :  { %s291_s20 = scalar_lea.vmem %s21_s19, 2048  ;;  %p296_p1 = scmp.lt.s32.totalorder %s21_s19, %s21_s19 }
   0x4   :  { %p292_p0 = scmp.ne.s32.totalorder %s21_s19, %s291_s20  ;;  %p297_p2 = scmp.lt.s32.totalorder %s291_s20, %s291_s20 }
   0x6   :  { %p298_p3 = por %p297_p2, %p296_p1 }
   0x8   :  { %p299_p4 = pnand %p298_p3, %p292_p0 }
   0xa   :  { %302 = shalt.err (!%p299_p4)
}
   0xb   :  { %s328_s21 = smov 128   ;;  %s329_s22 = smov 8  }
   0xc   :  { %26 = dma.hbm_to_vmem [thread:$0]  %s391_s1, 2048, %s21_s19, [#allocation6], %s328_s21, %s328_s21, %s329_s22  }
   0xd   :  { %323 = dma.done.wait [#allocation6], 2048  }
   0xe   :  { %324 = vsyncadd [#allocation6], 4294965248  ;;  %v330_v0 = vmov 0.0   ;;  %vm331_vm0 = vmmov 0   ;;  %v332_v1 = vmov 0   ;;  %v58_v2 = vld [vmem:[#allocation5 + $0x78] sm:$0xff]  ;;  %v137_v21 = vlaneseq }
   0xf   :  { %232 = vmatprep.subr.mxu0 %v330_v0  ;;  %264 = vmatprep.mubr.msk.f32.mxu0 %vm331_vm0, %v330_v0  ;;  %v57_v3 = vld [vmem:[#allocation5 + $0x70] sm:$0xff]  ;;  %v167_v4 = vld [vmem:[%s393_s3] sm:$0xff]  ;;  %v55_v6 = vld [vmem:[#allocation5 + $0x60] sm:$0xff]  ;;  %vm38_vm1 = vcmask 7168   ;;  %v333_v20 = vmov -inf  }
  0x10   :  { %276 = vset.pattern.permute.xlu1 %v332_v1  ;;  %275 = vset.pattern.permute.xlu0 %v332_v1  ;;  %v56_v5 = vld [vmem:[#allocation5 + $0x68] sm:$0xff]  ;;  %v54_v7 = vld [vmem:[#allocation5 + $0x58] sm:$0xff]  ;;  %v53_v8 = vld [vmem:[#allocation5 + $0x50] sm:$0xff]  ;;  %39 = vst.msk [vmem:[#allocation2] sm:$0xff] %vm38_vm1, %v333_v20  ;;  %v138_v22 = vand.u32 127, %v137_v21 }
  0x11   :  { %233 = vmatpush3.xpose.msra.mxu0 %v58_v2  ;;  %169 = vperm.xlu1 %276, %v167_v4   ;;  %v52_v9 = vld [vmem:[#allocation5 + $0x48] sm:$0xff]  ;;  %v51_v10 = vld [vmem:[#allocation5 + $0x40] sm:$0xff]  ;;  %v50_v11 = vld [vmem:[#allocation5 + $0x38] sm:$0xff]  ;;  %40 = vst.msk [vmem:[#allocation3] sm:$0xff] %vm38_vm1, %v330_v0 }
  0x12   :  { %234 = vmatprep.subr.mxu0 %v330_v0  ;;  %v49_v12 = vld [vmem:[#allocation5 + $0x30] sm:$0xff]  ;;  %v48_v13 = vld [vmem:[#allocation5 + $0x28] sm:$0xff]  ;;  %v47_v14 = vld [vmem:[#allocation5 + $0x20] sm:$0xff]  ;;  %41 = vst.msk [vmem:[#allocation4] sm:$0xff] %vm38_vm1, %v330_v0  ;;  %vm142_vm3 = vcmp.lt.s32.totalorder %v138_v22, 16 }
  0x13   :  { %v46_v15 = vld [vmem:[#allocation5 + $0x18] sm:$0xff]  ;;  %v45_v16 = vld [vmem:[#allocation5 + $0x10] sm:$0xff]  ;;  %v44_v17 = vld [vmem:[#allocation5 + $0x8] sm:$0xff] }
  0x14   :  { %v43_v18 = vld [vmem:[#allocation5] sm:$0xff]  ;;  %v42_v19 = vld [vmem:[%s390_s0] sm:$0xff]  ;;  %s334_s0 = smov [#allocation8]  }
  0x15   :  { %235 = vmatpush3.xpose.msra.mxu0 %v57_v3  ;;  %v214_v24 = vld [vmem:[%s392_s2] ss:$0 sm:$0xff]  ;;  %s201_s2 = sshll.u32 %s334_s0, 4  ;;  %s202_s2 = int_to_ptr.vmem [resolvable:$true] %s201_s2 }
  0x16   :  { %236 = vmatprep.subr.mxu0 %v330_v0  ;;  %s303_s29 = scalar_lea.vmem %s202_s2, 128  ;;  %p308_p6 = scmp.lt.s32.totalorder %s202_s2, %s202_s2 }
  0x17   :  { %v144_v31 = vld [vmem:[#allocation2] sm:$0xff]  ;;  %p304_p5 = scmp.ne.s32.totalorder %s202_s2, %s303_s29  ;;  %p309_p7 = scmp.lt.s32.totalorder %s303_s29, %s303_s29 }
  0x19   :  { %237 = vmatpush3.xpose.msra.mxu0 %v56_v5  ;;  %p310_p8 = por %p309_p7, %p308_p6 }
  0x1a   :  { %238 = vmatprep.subr.mxu0 %v330_v0 }
  0x1b   :  { %p311_p9 = pnand %p310_p8, %p304_p5 }
  0x1d   :  { %239 = vmatpush3.xpose.msra.mxu0 %v55_v6 }
  0x1e   :  { %240 = vmatprep.subr.mxu0 %v330_v0 }
  0x21   :  { %241 = vmatpush3.xpose.msra.mxu0 %v54_v7 }
  0x22   :  { %242 = vmatprep.subr.mxu0 %v330_v0 }
  0x25   :  { %243 = vmatpush3.xpose.msra.mxu0 %v53_v8 }
  0x26   :  { %244 = vmatprep.subr.mxu0 %v330_v0 }
  0x29   :  { %245 = vmatpush3.xpose.msra.mxu0 %v52_v9 }
  0x2a   :  { %246 = vmatprep.subr.mxu0 %v330_v0 }
  0x2d   :  { %247 = vmatpush3.xpose.msra.mxu0 %v51_v10 }
  0x2e   :  { %248 = vmatprep.subr.mxu0 %v330_v0 }
  0x31   :  { %249 = vmatpush3.xpose.msra.mxu0 %v50_v11 }
  0x32   :  { %250 = vmatprep.subr.mxu0 %v330_v0 }
  0x35   :  { %251 = vmatpush3.xpose.msra.mxu0 %v49_v12 }
  0x36   :  { %252 = vmatprep.subr.mxu0 %v330_v0 }
  0x39   :  { %253 = vmatpush3.xpose.msra.mxu0 %v48_v13 }
  0x3a   :  { %254 = vmatprep.subr.mxu0 %v330_v0 }
  0x3d   :  { %255 = vmatpush3.xpose.msra.mxu0 %v47_v14 }
  0x3e   :  { %256 = vmatprep.subr.mxu0 %v330_v0 }
  0x41   :  { %257 = vmatpush3.xpose.msra.mxu0 %v46_v15 }
  0x42   :  { %258 = vmatprep.subr.mxu0 %v330_v0 }
  0x45   :  { %259 = vmatpush3.xpose.msra.mxu0 %v45_v16 }
  0x46   :  { %260 = vmatprep.subr.mxu0 %v330_v0 }
  0x49   :  { %261 = vmatpush3.xpose.msra.mxu0 %v44_v17 }
  0x4a   :  { %262 = vmatprep.subr.mxu0 %v330_v0 }
  0x4d   :  { %263 = vmatpush3.xpose.msra.mxu0 %v43_v18 }
  0x50   :  { %265 = vmatmul.mubr.f32.vlgmr.msra.gmra.mxu0 %v42_v19 }
  0x8c   :  { %v170_v23 = vpop.permute.xlu1 %169 }
  0x8d   :  { %vm171_vm2 = vcmp.eq.s32.totalorder %v138_v22, %v170_v23 }
 0x110   :  { %v132_v25 = vpop.f32.mrf.mxu0 }
 0x111   :  { %v133_v26 = vadd.f32 %v214_v24, %v132_v25 }
 0x112   :  { %v266_v27 = vpop.f32.mrf.mxu0 }
 0x113   :  { %136 = vst [vmem:[#allocation8] sm:$0xff] %v133_v26  ;;  %v143_v28 = vsel %vm142_vm3, %v133_v26, -inf  ;;  %v172_v29 = vsel %vm171_vm2, %v133_v26, 0.0  ;;  %v176_v30 = vsel %vm142_vm3, %v133_v26, 0.0 }
 0x114   :  { %145 = vmax.xlane.f32.xlu0 %v143_v28 }
 0x19d   :  { %v146_v32 = vpop.xlane.xlu0 %145 }
 0x19e   :  { %v147_v33 = vmax.f32 %v144_v31, %v146_v32 }
 0x1a0   :  { %v148_v34 = vsub.f32 %v144_v31, %v147_v33  ;;  %166 = vst.msk [vmem:[#allocation2] sm:$0xff] %vm38_vm1, %v147_v33  ;;  %155 = vperm.xlu0 %275, %v147_v33  }
 0x21b   :  { %v156_v35 = vpop.permute.xlu0 %155 }
 0x21c   :  { %v158_v36 = vsub.f32 %v143_v28, %v156_v35 }
 0x21e   :  { %v159_v37 = vmul.f32 1.442695, %v158_v36 }
 0x220   :  { %277 = vpow2.f32 %v159_v37 }
 0x22d   :  { %v278_v38 = vpop.eup %277 }
 0x22e   :  { %161 = vadd.xlane.f32.xlu1 %v278_v38 }
 0x232   :  { %173 = vadd.xlane.f32.xlu1 %v172_v29 }
 0x236   :  { %177 = vadd.xlane.f32.xlu1 %v176_v30 }
 0x237   :  { %314 = shalt.err (!%p311_p9)
}
 0x238   :  { %204 = dma.vmem_to_hbm [thread:$0]  %s202_s2, 128, %s394_s4, [#allocation7]   ;;  %v149_v39 = vmul.f32 1.442695, %v148_v34  ;;  %v151_v41 = vld [vmem:[#allocation3] sm:$0xff]  ;;  %v181_v50 = vld [vmem:[#allocation4] sm:$0xff] }
 0x239   :  { %v187_v55 = vld [vmem:[#allocation2] sm:$0xff] }
 0x23a   :  { %279 = vpow2.f32 %v149_v39 }
 0x247   :  { %v280_v40 = vpop.eup %279 }
 0x248   :  { %v152_v42 = vmul.f32 %v280_v40, %v151_v41 }
 0x2b7   :  { %v162_v43 = vpop.xlane.xlu1 %161 }
 0x2b8   :  { %v163_v44 = vadd.f32 %v162_v43, %v152_v42 }
 0x2ba   :  { %165 = vst.msk [vmem:[#allocation3] sm:$0xff] %vm38_vm1, %v163_v44 }
 0x2bb   :  { %v174_v45 = vpop.xlane.xlu1 %173 }
 0x2bc   :  { %v175_v47 = vmul.f32 0.9, %v174_v45 }
 0x2bf   :  { %v178_v46 = vpop.xlane.xlu1 %177 }
 0x2c0   :  { %v179_v48 = vmul.f32 0.00625, %v178_v46 }
 0x2c1   :  { %v188_v49 = vld [vmem:[#allocation3] sm:$0xff] }
 0x2c2   :  { %281 = vlog2.f32 %v188_v49  ;;  %v180_v51 = vadd.f32 %v179_v48, %v175_v47 }
 0x2c4   :  { %v182_v52 = vadd.f32 %v181_v50, %v180_v51 }
 0x2c6   :  { %183 = vst.msk [vmem:[#allocation4] sm:$0xff] %vm38_vm1, %v182_v52 }
 0x2cd   :  { %v192_v57 = vld [vmem:[#allocation4] sm:$0xff] }
 0x2cf   :  { %v282_v53 = vpop.eup %281 }
 0x2d0   :  { %v190_v54 = vmul.f32 0.6931472, %v282_v53 }
 0x2d2   :  { %v191_v56 = vadd.f32 %v190_v54, %v187_v55 }
 0x2d4   :  { %v193_v58 = vsub.f32 %v191_v56, %v192_v57 }
 0x2d6   :  { %194 = vst.msk [vmem:[%s395_s5] sm:$0xff] %vm38_vm1, %v193_v58 }
 0x2d7   :  { %325 = dma.done.wait [#allocation7], 128  }
 0x2d8   :  { %326 = vsyncadd [#allocation7], 4294967168 }
 0x2d9   :  { %212 = vsyncpa [#allocation6], 1 }
 0x2da   :  { %213 = vsyncpa [#allocation7], 1 }

</bundles_post_ra>
